<compile_context>
chip_gen: v7x
topology: tpu7x:2x2x1
jax: 0.10.0
libtpu: 0.0.40
codegen_flags: <defaults>
</compile_context>

<pallas_src>
import functools

import jax
import jax.numpy as jnp
from jax.experimental import pallas as pl
from jax.experimental.pallas import tpu as pltpu


def _ce_multi_kernel(pred_ref, tgt_ref, out_ref, *, hw, block_rows, num_classes):
    """One (batch, spatial-chunk) tile: pred_ref / tgt_ref are (1, C, R, 128)."""
    j = pl.program_id(1)
    r = block_rows

    # ---- class 0 seeds the running (target max, picked logit) pair + pred max.
    p0 = pred_ref[0, 0].astype(jnp.float32)            # (R, 128)
    t_best = tgt_ref[0, 0]                              # (R, 128), native dtype
    picked = p0
    p_max = p0

    # ---- unrolled class scan: strict '>' preserves torch.argmax's
    #      first-occurrence tie-breaking.  Pure VPU compare/select/max.
    for cc in range(1, num_classes):
        pc = pred_ref[0, cc].astype(jnp.float32)
        tc = tgt_ref[0, cc]
        take = tc > t_best
        t_best = jnp.where(take, tc, t_best)
        picked = jnp.where(take, pc, picked)
        p_max = jnp.maximum(p_max, pc)

    # ---- second unrolled pass: numerically stable sum-exp over classes (EUP).
    s = jnp.exp(pred_ref[0, 0].astype(jnp.float32) - p_max)
    for cc in range(1, num_classes):
        s = s + jnp.exp(pred_ref[0, cc].astype(jnp.float32) - p_max)

    loss = p_max + jnp.log(s) - picked                  # (R, 128) = lse - picked

    # ---- mask spatial positions past the true extent (128-pad columns and
    #      cdiv-tail garbage rows).  Keep this select immediately before the
    #      accumulate so NaN/Inf computed on pad data never reaches the sum.
    row = jax.lax.broadcasted_iota(jnp.int32, (r, 128), 0)
    lane = jax.lax.broadcasted_iota(jnp.int32, (r, 128), 1)
    pos = (j * r + row) * 128 + lane
    loss = jnp.where(pos < hw, loss, 0.0)

    # ---- per-block partial sum: one sublane reduce; lane reduce + mean in JAX.
    out_ref[0, 0] = jnp.sum(loss, axis=0, keepdims=True)        # (1, 128)


def ce_loss_multi(pred, target, *, block_rows=None,
                  input_budget_bytes=4 << 20, vmem_limit_bytes=None):
    """pred, target: (N, C, H, W).  Returns the scalar mean cross-entropy loss."""
    n, c, h, w = pred.shape
    hw = h * w
    s = pl.cdiv(hw, 128)
    pad = s * 128 - hw

    pred3 = pred.reshape(n, c, hw)
    tgt3 = target.reshape(n, c, hw)
    if pad:
        # TODO(synk): for hw % 128 != 0 this pad is an extra XLA copy of both
        # inputs; a ragged last block (pl.BoundedSlice) would avoid it.
        pred3 = jnp.pad(pred3, ((0, 0), (0, 0), (0, pad)))
        tgt3 = jnp.pad(tgt3, ((0, 0), (0, 0), (0, pad)))
    pred4 = pred3.reshape(n, c, s, 128)
    tgt4 = tgt3.reshape(n, c, s, 128)

    p_item = jnp.dtype(pred.dtype).itemsize
    t_item = jnp.dtype(target.dtype).itemsize

    if block_rows is None:
        # Real per-step VMEM bytes (no sublane/lane padding: R multiple of 8,
        # lanes == 128):  C * R * 128 * (pred_item + tgt_item)  per buffer,
        # x2 pipeline buffers, plus a handful of (R, 128) f32 temporaries.
        per_row = c * 128 * (p_item + t_item)
        block_rows = max(8, (input_budget_bytes // per_row) // 8 * 8)
        # Keep >= ~8 grid steps where possible so the pipeline fill is amortized.
        min_chunks = pl.cdiv(8, n)
        if min_chunks > 1:
            block_rows = min(block_rows, max(8, (s // min_chunks) // 8 * 8))
    if block_rows >= s:
        block_rows = s                                   # full axis: always legal
    else:
        block_rows = max(8, (block_rows // 8) * 8)       # sublane-aligned tiles

    n_chunks = pl.cdiv(s, block_rows)

    in_bytes = n * c * s * 128 * (p_item + t_item)
    out_bytes = n * n_chunks * 128 * 4
    cost = pl.CostEstimate(
        flops=10 * n * c * hw,
        transcendentals=n * hw * (c + 1),   # exp per (class, pixel) + log per pixel
        bytes_accessed=in_bytes + out_bytes,
    )

    partials = pl.pallas_call(
        functools.partial(_ce_multi_kernel, hw=hw, block_rows=block_rows,
                          num_classes=c),
        out_shape=jax.ShapeDtypeStruct((n, n_chunks, 1, 128), jnp.float32),
        grid_spec=pltpu.PrefetchScalarGridSpec(
            num_scalar_prefetch=0,
            grid=(n, n_chunks),
            in_specs=[
                pl.BlockSpec((1, c, block_rows, 128), lambda b, j: (b, 0, j, 0)),
                pl.BlockSpec((1, c, block_rows, 128), lambda b, j: (b, 0, j, 0)),
            ],
            out_specs=pl.BlockSpec((1, 1, 1, 128), lambda b, j: (b, j, 0, 0)),
        ),
        compiler_params=pltpu.CompilerParams(
            # Per-block partial-sum outputs -> no cross-block state, so both
            # axes are safely "parallel" (v7x megacore splits the grid over 2 TCs).
            dimension_semantics=("parallel", "parallel"),
            vmem_limit_bytes=vmem_limit_bytes,
        ),
        cost_estimate=cost,
    )(pred4, tgt4)

    # Lane reduce + mean over all N*H*W pixels happen once, outside the kernel.
    return jnp.sum(partials) / jnp.float32(n * hw)


def _reference(pred, target):
    mask = jnp.argmax(target, axis=1)                    # (N, H, W)
    logp = jax.nn.log_softmax(pred, axis=1)              # (N, C, H, W)
    picked = jnp.take_along_axis(logp, mask[:, None], axis=1)[:, 0]
    return -jnp.mean(picked)


if __name__ == "__main__":
    key = jax.random.PRNGKey(0)
    k1, k2, k3, k4 = jax.random.split(key, 4)

    # shape implied by the module: small NCHW logits + dense soft target
    N, C, H, W = 2, 4, 16, 16
    pred = jax.random.normal(k1, (N, C, H, W), dtype=jnp.float32)
    target = jax.random.normal(k2, (N, C, H, W), dtype=jnp.float32)
    loss = jax.block_until_ready(ce_loss_multi(pred, target))
    ref = _reference(pred, target)
    assert jnp.allclose(loss, ref, rtol=1e-5, atol=1e-5), (loss, ref)

    # multi-chunk tiling + cdiv tail rows (S=18 rows, block_rows=8 -> 3 chunks)
    pred_b = jax.random.normal(k3, (2, 4, 48, 48), dtype=jnp.float32)
    target_b = jax.random.normal(k4, (2, 4, 48, 48), dtype=jnp.float32)
    loss_b = jax.block_until_ready(ce_loss_multi(pred_b, target_b, block_rows=8))
    ref_b = _reference(pred_b, target_b)
    assert jnp.allclose(loss_b, ref_b, rtol=1e-5, atol=1e-5), (loss_b, ref_b)

    # H*W not a multiple of 128 exercises the 128-pad column mask
    k5, k6 = jax.random.split(k4)
    pred_c = jax.random.normal(k5, (2, 4, 18, 18), dtype=jnp.float32)
    target_c = jax.random.normal(k6, (2, 4, 18, 18), dtype=jnp.float32)
    loss_c = jax.block_until_ready(ce_loss_multi(pred_c, target_c))
    ref_c = _reference(pred_c, target_c)
    assert jnp.allclose(loss_c, ref_c, rtol=1e-5, atol=1e-5), (loss_c, ref_c)

    print("KERNEL_OK")
</pallas_src>

<mosaic_0001>
module attributes {stable_mosaic.version = 11 : i64} {
  func.func @_ce_multi_kernel(%arg0: i32, %arg1: i32, %arg2: memref<1x4x2x128xf32, #tpu.memory_space<vmem>>, %arg3: memref<1x4x2x128xf32, #tpu.memory_space<vmem>>, %arg4: memref<1x1x1x128xf32, #tpu.memory_space<vmem>>) attributes {dimension_semantics = [#tpu.dimension_semantics<parallel>, #tpu.dimension_semantics<parallel>], iteration_bounds = array<i64: 2, 1>, scalar_prefetch = 0 : i64, scratch_operands = 0 : i64, tpu.core_type = #tpu.core_type<tc>, window_params = [{transform_indices = @transform_0, window_bounds = array<i64: 1, 4, 2, 128>}, {transform_indices = @transform_1, window_bounds = array<i64: 1, 4, 2, 128>}, {transform_indices = @transform_2, window_bounds = array<i64: 1, 1, 1, 128>}]} {
    %c0 = arith.constant 0 : index
    %c0_0 = arith.constant 0 : index
    %c0_1 = arith.constant 0 : index
    %c0_2 = arith.constant 0 : index
    %0 = vector.load %arg2[%c0, %c0_0, %c0_1, %c0_2] : memref<1x4x2x128xf32, #tpu.memory_space<vmem>>, vector<1x1x2x128xf32>
    %1 = vector.shape_cast %0 : vector<1x1x2x128xf32> to vector<2x128xf32>
    %c0_3 = arith.constant 0 : index
    %c0_4 = arith.constant 0 : index
    %c0_5 = arith.constant 0 : index
    %c0_6 = arith.constant 0 : index
    %2 = vector.load %arg3[%c0_3, %c0_4, %c0_5, %c0_6] : memref<1x4x2x128xf32, #tpu.memory_space<vmem>>, vector<1x1x2x128xf32>
    %3 = vector.shape_cast %2 : vector<1x1x2x128xf32> to vector<2x128xf32>
    %c0_7 = arith.constant 0 : index
    %c1 = arith.constant 1 : index
    %c0_8 = arith.constant 0 : index
    %c0_9 = arith.constant 0 : index
    %4 = vector.load %arg2[%c0_7, %c1, %c0_8, %c0_9] : memref<1x4x2x128xf32, #tpu.memory_space<vmem>>, vector<1x1x2x128xf32>
    %5 = vector.shape_cast %4 : vector<1x1x2x128xf32> to vector<2x128xf32>
    %c0_10 = arith.constant 0 : index
    %c1_11 = arith.constant 1 : index
    %c0_12 = arith.constant 0 : index
    %c0_13 = arith.constant 0 : index
    %6 = vector.load %arg3[%c0_10, %c1_11, %c0_12, %c0_13] : memref<1x4x2x128xf32, #tpu.memory_space<vmem>>, vector<1x1x2x128xf32>
    %7 = vector.shape_cast %6 : vector<1x1x2x128xf32> to vector<2x128xf32>
    %8 = arith.cmpf ogt, %7, %3 : vector<2x128xf32>
    %9 = arith.select %8, %7, %3 : vector<2x128xi1>, vector<2x128xf32>
    %10 = arith.select %8, %5, %1 : vector<2x128xi1>, vector<2x128xf32>
    %11 = arith.maximumf %1, %5 : vector<2x128xf32>
    %c0_14 = arith.constant 0 : index
    %c2 = arith.constant 2 : index
    %c0_15 = arith.constant 0 : index
    %c0_16 = arith.constant 0 : index
    %12 = vector.load %arg2[%c0_14, %c2, %c0_15, %c0_16] : memref<1x4x2x128xf32, #tpu.memory_space<vmem>>, vector<1x1x2x128xf32>
    %13 = vector.shape_cast %12 : vector<1x1x2x128xf32> to vector<2x128xf32>
    %c0_17 = arith.constant 0 : index
    %c2_18 = arith.constant 2 : index
    %c0_19 = arith.constant 0 : index
    %c0_20 = arith.constant 0 : index
    %14 = vector.load %arg3[%c0_17, %c2_18, %c0_19, %c0_20] : memref<1x4x2x128xf32, #tpu.memory_space<vmem>>, vector<1x1x2x128xf32>
    %15 = vector.shape_cast %14 : vector<1x1x2x128xf32> to vector<2x128xf32>
    %16 = arith.cmpf ogt, %15, %9 : vector<2x128xf32>
    %17 = arith.select %16, %15, %9 : vector<2x128xi1>, vector<2x128xf32>
    %18 = arith.select %16, %13, %10 : vector<2x128xi1>, vector<2x128xf32>
    %19 = arith.maximumf %11, %13 : vector<2x128xf32>
    %c0_21 = arith.constant 0 : index
    %c3 = arith.constant 3 : index
    %c0_22 = arith.constant 0 : index
    %c0_23 = arith.constant 0 : index
    %20 = vector.load %arg2[%c0_21, %c3, %c0_22, %c0_23] : memref<1x4x2x128xf32, #tpu.memory_space<vmem>>, vector<1x1x2x128xf32>
    %21 = vector.shape_cast %20 : vector<1x1x2x128xf32> to vector<2x128xf32>
    %c0_24 = arith.constant 0 : index
    %c3_25 = arith.constant 3 : index
    %c0_26 = arith.constant 0 : index
    %c0_27 = arith.constant 0 : index
    %22 = vector.load %arg3[%c0_24, %c3_25, %c0_26, %c0_27] : memref<1x4x2x128xf32, #tpu.memory_space<vmem>>, vector<1x1x2x128xf32>
    %23 = vector.shape_cast %22 : vector<1x1x2x128xf32> to vector<2x128xf32>
    %24 = arith.cmpf ogt, %23, %17 : vector<2x128xf32>
    %25 = arith.select %24, %21, %18 : vector<2x128xi1>, vector<2x128xf32>
    %26 = arith.maximumf %19, %21 : vector<2x128xf32>
    %c0_28 = arith.constant 0 : index
    %c0_29 = arith.constant 0 : index
    %c0_30 = arith.constant 0 : index
    %c0_31 = arith.constant 0 : index
    %27 = vector.load %arg2[%c0_28, %c0_29, %c0_30, %c0_31] : memref<1x4x2x128xf32, #tpu.memory_space<vmem>>, vector<1x1x2x128xf32>
    %28 = vector.shape_cast %27 : vector<1x1x2x128xf32> to vector<2x128xf32>
    %29 = arith.subf %28, %26 : vector<2x128xf32>
    %30 = math.exp %29 : vector<2x128xf32>
    %c0_32 = arith.constant 0 : index
    %c1_33 = arith.constant 1 : index
    %c0_34 = arith.constant 0 : index
    %c0_35 = arith.constant 0 : index
    %31 = vector.load %arg2[%c0_32, %c1_33, %c0_34, %c0_35] : memref<1x4x2x128xf32, #tpu.memory_space<vmem>>, vector<1x1x2x128xf32>
    %32 = vector.shape_cast %31 : vector<1x1x2x128xf32> to vector<2x128xf32>
    %33 = arith.subf %32, %26 : vector<2x128xf32>
    %34 = math.exp %33 : vector<2x128xf32>
    %35 = arith.addf %30, %34 : vector<2x128xf32>
    %c0_36 = arith.constant 0 : index
    %c2_37 = arith.constant 2 : index
    %c0_38 = arith.constant 0 : index
    %c0_39 = arith.constant 0 : index
    %36 = vector.load %arg2[%c0_36, %c2_37, %c0_38, %c0_39] : memref<1x4x2x128xf32, #tpu.memory_space<vmem>>, vector<1x1x2x128xf32>
    %37 = vector.shape_cast %36 : vector<1x1x2x128xf32> to vector<2x128xf32>
    %38 = arith.subf %37, %26 : vector<2x128xf32>
    %39 = math.exp %38 : vector<2x128xf32>
    %40 = arith.addf %35, %39 : vector<2x128xf32>
    %c0_40 = arith.constant 0 : index
    %c3_41 = arith.constant 3 : index
    %c0_42 = arith.constant 0 : index
    %c0_43 = arith.constant 0 : index
    %41 = vector.load %arg2[%c0_40, %c3_41, %c0_42, %c0_43] : memref<1x4x2x128xf32, #tpu.memory_space<vmem>>, vector<1x1x2x128xf32>
    %42 = vector.shape_cast %41 : vector<1x1x2x128xf32> to vector<2x128xf32>
    %43 = arith.subf %42, %26 : vector<2x128xf32>
    %44 = math.exp %43 : vector<2x128xf32>
    %45 = arith.addf %40, %44 : vector<2x128xf32>
    %46 = math.log %45 : vector<2x128xf32>
    %47 = arith.addf %26, %46 : vector<2x128xf32>
    %48 = arith.subf %47, %25 : vector<2x128xf32>
    %49 = tpu.iota {dimensions = array<i32: 0>} : vector<2x128xi32>
    %50 = tpu.iota {dimensions = array<i32: 1>} : vector<2x128xi32>
    %c2_i32 = arith.constant 2 : i32
    %51 = arith.muli %arg1, %c2_i32 : i32
    %52 = vector.broadcast %51 : i32 to vector<2x128xi32>
    %53 = arith.addi %52, %49 : vector<2x128xi32>
    %c128_i32 = arith.constant 128 : i32
    %54 = vector.broadcast %c128_i32 : i32 to vector<2x128xi32>
    %55 = arith.muli %53, %54 : vector<2x128xi32>
    %56 = arith.addi %55, %50 : vector<2x128xi32>
    %c256_i32 = arith.constant 256 : i32
    %57 = vector.broadcast %c256_i32 : i32 to vector<2x128xi32>
    %58 = arith.cmpi slt, %56, %57 : vector<2x128xi32>
    %cst = arith.constant 0.000000e+00 : f32
    %59 = vector.broadcast %cst : f32 to vector<2x128xf32>
    %60 = arith.select %58, %48, %59 : vector<2x128xi1>, vector<2x128xf32>
    %cst_44 = arith.constant dense<0.000000e+00> : vector<128xf32>
    %61 = vector.multi_reduction <add>, %60, %cst_44 [0] : vector<2x128xf32> to vector<128xf32>
    %62 = vector.shape_cast %61 : vector<128xf32> to vector<1x128xf32>
    %c0_45 = arith.constant 0 : index
    %c0_46 = arith.constant 0 : index
    %c0_47 = arith.constant 0 : index
    %c0_48 = arith.constant 0 : index
    %63 = vector.load %arg4[%c0_45, %c0_46, %c0_47, %c0_48] : memref<1x1x1x128xf32, #tpu.memory_space<vmem>>, vector<1x1x1x128xf32>
    %64 = vector.shape_cast %63 : vector<1x1x1x128xf32> to vector<1x128xf32>
    %65 = vector.shape_cast %62 : vector<1x128xf32> to vector<1x1x1x128xf32>
    tpu.vector_store %arg4[%c0_45, %c0_46, %c0_47, %c0_48], %65 {strides = array<i32>} : memref<1x1x1x128xf32, #tpu.memory_space<vmem>>, vector<1x1x1x128xf32>,
    return
  }
  func.func @transform_0(%arg0: i32, %arg1: i32) -> (i32, i32, i32, i32) {
    %c0_i32 = arith.constant 0 : i32
    %c0_i32_0 = arith.constant 0 : i32
    %c0_i32_1 = arith.constant 0 : i32
    return %arg0, %c0_i32, %arg1, %c0_i32_0 : i32, i32, i32, i32
  }
  func.func @transform_1(%arg0: i32, %arg1: i32) -> (i32, i32, i32, i32) {
    %c0_i32 = arith.constant 0 : i32
    %c0_i32_0 = arith.constant 0 : i32
    %c0_i32_1 = arith.constant 0 : i32
    return %arg0, %c0_i32, %arg1, %c0_i32_0 : i32, i32, i32, i32
  }
  func.func @transform_2(%arg0: i32, %arg1: i32) -> (i32, i32, i32, i32) {
    %c0_i32 = arith.constant 0 : i32
    %c0_i32_0 = arith.constant 0 : i32
    %c0_i32_1 = arith.constant 0 : i32
    return %arg0, %arg1, %c0_i32, %c0_i32_0 : i32, i32, i32, i32
  }
}

</mosaic_0001>

<bundles_post_ra>
// kernel: tpu_custom_call.1
= control target key start
LH: loop header
LB: loop body
LE: loop exit
PB: predicated region body
PF: predicated region fallthrough
CT: control target
= control target key end

     0   :  { %7 = vsyncpa [#allocation3], 0  ;;  %s913_s0 = inlined_call_operand.hbm [shape: f32[2,4,2,128], index: 0, kind: input, shape index: {}]   ;;  %s914_s1 = inlined_call_operand.hbm [shape: f32[2,4,2,128], index: 1, kind: input, shape index: {}]   ;;  %s915_s2 = inlined_call_operand.hbm [shape: f32[2,1,1,128], index: 2, kind: output, shape index: {}]  }
   0x1   :  { %9 = vsyncpa [#allocation3 + $0x1], 0 }
   0x2   :  { %10 = vsyncpa [#allocation6], 0 }
   0x3   :  { %12 = vsyncpa [#allocation6 + $0x1], 0 }
   0x4   :  { %13 = vsyncpa [#allocation4], 0 }
   0x5   :  { %15 = vsyncpa [#allocation4 + $0x1], 0  ;;  %s672_s9 = smov 0   ;;  %s674_s10 = smov 0  }
   0x6   :  { %s676_s11 = smov 0   ;;  %s678_s12 = smov 0  }
   0x7   :  { %s680_s13 = smov 0   ;;  %s682_s14 = smov 0  }
   0x8 LB: > { %s401_s15 = sadd.s32 4294967295, %s650_s14   ;;  %s402_s16 = sadd.s32 4294967294, %s650_s14   ;;  %s650_s14 = sphi %s682_s14, %s21_s14   ;;  %s646_s13 = sphi %s680_s13, %s933_s13   ;;  %s642_s12 = sphi %s678_s12, %s932_s12   ;;  %s638_s11 = sphi %s676_s11, %s931_s11   ;;  %s634_s10 = sphi %s674_s10, %s930_s10   ;;  %s630_s9 = sphi %s672_s9, %s929_s9  }
   0x9   : > { %s33_s17 = sadd.s32 1, %s646_s13  ;;  %s42_s18 = sadd.s32 1, %s638_s11 }
   0xa   : > { %p35_p0 = scmp.ge.s32.totalorder %s33_s17, 2  ;;  %p49_p1 = scmp.ne.s32.totalorder %s638_s11, %s634_s10 }
   0xb   : > { %p50_p2 = scmp.eq.s32.totalorder %s650_s14, 0  ;;  %p55_p3 = scmp.ne.s32.totalorder %s634_s10, %s630_s9 }
   0xc   : > { %s935_s17 = smov (%p35_p0, %s33_s17), 0  ;;  %p56_p5 = scmp.eq.s32.totalorder %s401_s15, 0 }
   0xd   : > { %p713_p4 = por %p50_p2, %p49_p1  ;;  %s37_s20 = ssub.s32 %s646_s13, %s935_s17 }
   0xe   : > { %p109_p6 = scmp.eq.s32.totalorder %s401_s15, 1  ;;  %p40_p7 = scmp.eq.s32.totalorder %s37_s20, 0 }
   0xf   : > { %p719_p8 = por %p56_p5, %p55_p3  ;;  %p115_p10 = scmp.eq.s32.totalorder %s402_s16, 1 }
  0x10   : > { %p723_p9 = por %p109_p6, %p49_p1  ;;  %p442_p13 = scmp.lt.s32.totalorder %s650_s14, 2 }
  0x11   : > { %s919_s21 = scalar_select %p719_p8, 1, 0 }
  0x12   : > { %s920_s22 = scalar_select %p723_p9, 1, 0 }
  0x13   : > { %s728_s23 = scalar_select %p40_p7, %s638_s11, %s42_s18  }
  0x14   : > { %p730_p11 = por %p115_p10, %p55_p3  ;;  %s737_s25 = sand.u32 1, %s638_s11  }
  0x15   : > { %s405_s26 = sshll.u32 %s737_s25, 3  ;;  %s423_s27 = sshll.u32 %s646_s13, 7 }
  0x16   : > { %s921_s24 = scalar_select %p730_p11, 1, 0 }
  0x17   : > { %s746_s30 = scalar_lea.hbm %s913_s0, %s423_s27  ;;  %s139_s3 = scalar_lea.vmem [#allocation2], %s405_s26 }
  0x18   : > { %s147_s4 = sshll.u32 %s139_s3, 4  ;;  %p754_p0 = pnand %p442_p13, %p713_p4  ;;  %s750_s4 = int_to_ptr.vmem [resolvable:$true] %s147_s4 }
  0x19   : > { %s136_s6 = scalar_lea.sflag [#allocation3], %s737_s25  ;;  %s504_s7 = scalar_lea.hbm %s746_s30, 128 }
  0x1a   : > { %p505_p2 = scmp.ne.s32.totalorder %s746_s30, %s504_s7  ;;  %p506_p3 = pneg %p754_p0 }
  0x1b   : > { %s509_s16 = scalar_lea.hbm %s913_s0, 256  ;;  %p510_p4 = scmp.lt.u32.totalorder %s746_s30, %s913_s0 }
  0x1c   : > { %p507_p5 = pnand %p506_p3, %p505_p2  ;;  %p511_p7 = scmp.lt.u32.totalorder %s509_s16, %s504_s7 }
  0x1d   : > { %p513_p13 = scmp.lt.u32.totalorder %s504_s7, %s746_s30 }
  0x1e   : > { %p508_p6 = pneg %p507_p5  ;;  %p512_p10 = por %p511_p7, %p510_p4 }
  0x20   : > { %p514_p12 = por %p513_p13, %p512_p10 }
  0x22   : > { %p515_p1 = pnand %p514_p12, %p508_p6 }
  0x24   : > { %518 = shalt.err (!%p515_p1)
}
  0x25   : > { %s519_s20 = scalar_lea.vmem %s750_s4, 128  ;;  %s652_s28 = smov [#allocation2]  }
  0x26   : > { %p520_p2 = scmp.ne.s32.totalorder %s750_s4, %s519_s20  ;;  %s524_s29 = sshll.u32 %s652_s28, 4  ;;  %s525_s29 = int_to_ptr.vmem [resolvable:$false] %s524_s29 }
  0x27   : > { %s526_s3 = scalar_lea.vmem %s525_s29, 256  ;;  %p527_p9 = scmp.lt.s32.totalorder %s750_s4, %s525_s29 }
  0x28   : > { %p522_p5 = pnand %p520_p2, %p506_p3  ;;  %p528_p4 = scmp.lt.s32.totalorder %s526_s3, %s519_s20 }
  0x2a   : > { %p523_p11 = pneg %p522_p5  ;;  %p529_p7 = por %p528_p4, %p527_p9 }
  0x2c   : > { %p530_p10 = pnand %p529_p7, %p523_p11 }
  0x2e   : > { %533 = shalt.err (!%p530_p10)
}
  0x2f   : > { %s653_s7 = smov 32   ;;  %s654_s8 = smov 2  }
  0x30   : > { %434 = dma.hbm_to_vmem [thread:$0]  (!%p754_p0), %s746_s30, 128, %s750_s4, %s136_s6, %s653_s7, %s653_s7, %s654_s8  }
  0x31   : > { %p177_p9 = scmp.lt.s32.totalorder %s650_s14, 3  ;;  %s796_s18 = scalar_lea.hbm %s914_s1, %s423_s27 }
  0x32   : > { %p923_p11 = scmp.ge.s32.totalorder %s650_s14, 1  ;;  %s161_s20 = scalar_lea.vmem [#allocation5], %s405_s26 }
  0x33   : > { %s169_s28 = sshll.u32 %s161_s20, 4  ;;  %s158_s30 = scalar_lea.sflag [#allocation6], %s737_s25  ;;  %s806_s28 = int_to_ptr.vmem [resolvable:$true] %s169_s28 }
  0x34   : > { %p800_p12 = pnand %p923_p11, %p177_p9  ;;  %s534_s4 = scalar_lea.hbm %s796_s18, 128 }
  0x35   : > { %p535_p1 = scmp.ne.s32.totalorder %s796_s18, %s534_s4  ;;  %s539_s29 = scalar_lea.hbm %s914_s1, 256 }
  0x36   : > { %p540_p2 = scmp.lt.u32.totalorder %s796_s18, %s914_s1  ;;  %p541_p5 = scmp.lt.u32.totalorder %s539_s29, %s534_s4 }
  0x37   : > { %p537_p6 = pnand %p535_p1, %p506_p3  ;;  %p543_p7 = scmp.lt.u32.totalorder %s534_s4, %s796_s18 }
  0x38   : > { %p542_p4 = por %p541_p5, %p540_p2 }
  0x39   : > { %p538_p13 = pneg %p537_p6 }
  0x3a   : > { %p544_p10 = por %p543_p7, %p542_p4 }
  0x3c   : > { %p545_p9 = pnand %p544_p10, %p538_p13 }
  0x3e   : > { %548 = shalt.err (!%p545_p9)
}
  0x3f   : > { %s549_s26 = scalar_lea.vmem %s806_s28, 128  ;;  %s655_s16 = smov [#allocation5]  }
  0x40   : > { %p550_p11 = scmp.ne.s32.totalorder %s806_s28, %s549_s26  ;;  %s554_s20 = sshll.u32 %s655_s16, 4  ;;  %s555_s20 = int_to_ptr.vmem [resolvable:$false] %s554_s20 }
  0x41   : > { %s556_s27 = scalar_lea.vmem %s555_s20, 256  ;;  %p557_p8 = scmp.lt.s32.totalorder %s806_s28, %s555_s20 }
  0x42   : > { %p552_p1 = pnand %p550_p11, %p506_p3  ;;  %p558_p2 = scmp.lt.s32.totalorder %s556_s27, %s549_s26 }
  0x44   : > { %p553_p6 = pneg %p552_p1  ;;  %p559_p5 = por %p558_p2, %p557_p8 }
  0x46   : > { %p560_p4 = pnand %p559_p5, %p553_p6 }
  0x48   : > { %563 = shalt.err (!%p560_p4)
}
  0x49   : > { %437 = dma.hbm_to_vmem [thread:$0]  (!%p754_p0), %s796_s18, 128, %s806_s28, %s158_s30, %s653_s7, %s653_s7, %s654_s8  }
  0x4a   : > { %181 = sbr.rel (%p800_p12) target bundleno = 158 (0x9e), region = 28  ;;  %s840_s4 = sand.u32 (!%p800_p12), 1, %s634_s10  }
  0x4b   : > { %s412_s6 = sshll.u32 (!%p800_p12), %s840_s4, 3  ;;  %s184_s29 = scalar_lea.sflag (!%p800_p12), [#allocation3], %s840_s4 }
  0x4c   : > { %s187_s5 = scalar_lea.vmem (!%p800_p12), [#allocation2], %s412_s6  ;;  %p925_p8 = scmp.ne.s32.totalorder (!%p800_p12), %s919_s21, 0 }
  0x51   : > { %617 = dma.done.wait (%p925_p8), %s184_s29, 128  }
  0x52   : > { %619 = vsyncadd (%p925_p8), %s184_s29, 4294967168  ;;  %s193_s25 = scalar_lea.sflag [#allocation6], %s840_s4  ;;  %s849_s7 = scalar_lea.vmem [#allocation5], %s412_s6 }
  0x53   : > { %621 = dma.done.wait (%p925_p8), %s193_s25, 128  }
  0x54   : > { %623 = vsyncadd (%p925_p8), %s193_s25, 4294967168  ;;  %v221_v0 = vld [vmem:[%s187_s5] sm:$0x3]  ;;  %v414_v1 = vld [vmem:[%s187_s5 + $0x2] sm:$0x3]  ;;  %v265_v24 = vlaneseq  ;;  %vm276_vm4 = vcmask 1041408  }
  0x55   : > { %v230_v2 = vmax.f32 %v221_v0, %v414_v1  ;;  %v416_v3 = vld [vmem:[%s187_s5 + $0x4] sm:$0x3]  ;;  %v418_v4 = vld [vmem:[%s187_s5 + $0x6] sm:$0x3]  ;;  %v222_v18 = vld [vmem:[%s849_s7] sm:$0x3] }
  0x56   : > { %v415_v19 = vld [vmem:[%s849_s7 + $0x2] sm:$0x3]  ;;  %v417_v26 = vld [vmem:[%s849_s7 + $0x4] sm:$0x3]  ;;  %v266_v27 = vshrl.u32 %v265_v24, 7  ;;  %v268_v31 = vand.u32 127, %v265_v24 }
  0x57   : > { %v238_v5 = vmax.f32 %v230_v2, %v416_v3  ;;  %vm227_vm0 = vcmp.gt.f32.partialorder %v415_v19, %v222_v18  ;;  %v419_v30 = vld [vmem:[%s849_s7 + $0x6] sm:$0x3]  ;;  %s220_s21 = scalar_lea.vmem [#allocation7], %s840_s4  ;;  %s420_s18 = sshll.u32 %s642_s12, 4 }
  0x58   : > { %v228_v25 = vsel %vm227_vm0, %v415_v19, %v222_v18  ;;  %v229_v28 = vsel %vm227_vm0, %v414_v1, %v221_v0  ;;  %v272_v32 = vmul.u32 128, %v266_v27  ;;  %s299_s8 = sshll.u32 %s220_s21, 4  ;;  %s866_s30 = scalar_lea.hbm %s915_s2, %s420_s18  ;;  %s861_s8 = int_to_ptr.vmem [resolvable:$true] %s299_s8 }
  0x59   : > { %v245_v6 = vmax.f32 %v238_v5, %v418_v4  ;;  %vm235_vm1 = vcmp.gt.f32.partialorder %v417_v26, %v228_v25  ;;  %s286_s3 = scalar_lea.sflag [#allocation4], %s840_s4  ;;  %s564_s15 = scalar_lea.vmem %s861_s8, 16 }
  0x5a   : > { %v236_v29 = vsel %vm235_vm1, %v417_v26, %v228_v25  ;;  %v237_v33 = vsel %vm235_vm1, %v416_v3, %v229_v28  ;;  %v273_v35 = vadd.s32 %v272_v32, %v268_v31  ;;  %p565_p0 = scmp.ne.s32.totalorder %s861_s8, %s564_s15  ;;  %p926_p3 = scmp.ne.s32.totalorder %s920_s22, 0 }
  0x5b   : > { %v246_v7 = vsub.f32 %v221_v0, %v245_v6  ;;  %v249_v8 = vsub.f32 %v414_v1, %v245_v6  ;;  %v253_v9 = vsub.f32 %v416_v3, %v245_v6  ;;  %v257_v10 = vsub.f32 %v418_v4, %v245_v6  ;;  %s656_s12 = smov [#allocation7]  }
  0x5c   : > { %vm243_vm2 = vcmp.gt.f32.partialorder %v419_v30, %v236_v29  ;;  %vm274_vm3 = vcmp.lt.s32.totalorder %v273_v35, 256  ;;  %p566_p12 = pnand %p565_p0, %p926_p3  ;;  %s568_s26 = sshll.u32 %s656_s12, 4  ;;  %s569_s26 = int_to_ptr.vmem [resolvable:$false] %s568_s26 }
  0x5d   : > { %v247_v11 = vmul.f32 1.442695, %v246_v7  ;;  %v250_v12 = vmul.f32 1.442695, %v249_v8  ;;  %v254_v13 = vmul.f32 1.442695, %v253_v9  ;;  %v244_v37 = vsel %vm243_vm2, %v418_v4, %v237_v33  ;;  %p571_p7 = scmp.lt.s32.totalorder %s861_s8, %s569_s26 }
  0x5e   : > { %v258_v14 = vmul.f32 1.442695, %v257_v10  ;;  %p567_p13 = pneg %p566_p12  ;;  %s570_s16 = scalar_lea.vmem %s569_s26, 32 }
  0x5f   : > { %494 = vpow2.f32 %v247_v11  ;;  %p572_p10 = scmp.lt.s32.totalorder %s570_s16, %s564_s15 }
  0x60   : > { %496 = vpow2.f32 %v250_v12 }
  0x61   : > { %498 = vpow2.f32 %v254_v13  ;;  %p573_p9 = por %p572_p10, %p571_p7 }
  0x62   : > { %500 = vpow2.f32 %v258_v14 }
  0x63   : > { %p574_p11 = pnand %p573_p9, %p567_p13 }
  0x69   : > { %v495_v15 = vpop.eup %494 }
  0x6a   : > { %v497_v16 = vpop.eup %496 }
  0x6b   : > { %v499_v17 = vpop.eup %498  ;;  %v252_v20 = vadd.f32 %v497_v16, %v495_v15 }
  0x6c   : > { %v501_v21 = vpop.eup %500 }
  0x6d   : > { %v256_v22 = vadd.f32 %v499_v17, %v252_v20 }
  0x6f   : > { %v260_v23 = vadd.f32 %v501_v21, %v256_v22 }
  0x71   : > { %502 = vlog2.f32 %v260_v23 }
  0x7b   : > { %v503_v34 = vpop.eup %502 }
  0x7c   : > { %v262_v36 = vmul.f32 0.6931472, %v503_v34 }
  0x7e   : > { %v263_v38 = vadd.f32 %v262_v36, %v245_v6 }
  0x80   : > { %v264_v39 = vsub.f32 %v263_v38, %v244_v37 }
  0x82   : > { %v275_v40 = vsel %vm274_vm3, %v264_v39, 0.0 }
  0x83   : > { %v277_v41 = vsel %vm276_vm4, %v275_v40, 0.0 }
  0x84   : > { %v278_v42 = vrot.slane %v277_v41, 4 }
  0x86   : > { %v279_v43 = vadd.f32 %v278_v42, %v277_v41 }
  0x88   : > { %v280_v44 = vrot.slane %v279_v43, 2 }
  0x8a   : > { %v281_v45 = vadd.f32 %v280_v44, %v279_v43 }
  0x8c   : > { %v282_v46 = vrot.slane %v281_v45, 1 }
  0x8e   : > { %v283_v47 = vadd.f32 %v282_v46, %v281_v45 }
  0x90   : > { %284 = vst [vmem:[%s220_s21] sm:$0x1] %v283_v47 }
  0x91   : > { %577 = shalt.err (!%p574_p11)
}
  0x92   : > { %s578_s20 = scalar_lea.hbm %s866_s30, 16  ;;  %s582_s6 = scalar_lea.hbm %s915_s2, 32 }
  0x93   : > { %p579_p1 = scmp.ne.s32.totalorder %s866_s30, %s578_s20  ;;  %p583_p5 = scmp.lt.u32.totalorder %s866_s30, %s915_s2 }
  0x94   : > { %p584_p4 = scmp.lt.u32.totalorder %s582_s6, %s578_s20  ;;  %p586_p0 = scmp.lt.u32.totalorder %s578_s20, %s866_s30 }
  0x95   : > { %p580_p6 = pnand %p579_p1, %p926_p3 }
  0x96   : > { %p585_p8 = por %p584_p4, %p583_p5 }
  0x97   : > { %p581_p2 = pneg %p580_p6 }
  0x98   : > { %p587_p12 = por %p586_p0, %p585_p8 }
  0x9a   : > { %p588_p13 = pnand %p587_p12, %p581_p2 }
  0x9c   : > { %591 = shalt.err (!%p588_p13)
}
  0x9d   : > { %429 = dma.vmem_to_hbm [thread:$0]  (%p926_p3), %s861_s8, 16, %s866_s30, %s286_s3  }
  0x9e PF: > { %s311_s25 = sand.u32 1, %s630_s9   ;;  %p927_p7 = scmp.ne.s32.totalorder %s921_s24, 0 }
  0x9f   : > { %p928_p10 = scmp.ge.s32.totalorder %s650_s14, 2  ;;  %s312_s7 = scalar_lea.sflag [#allocation4], %s311_s25 }
  0xa1   : > { %p439_p9 = pnand %p928_p10, %p927_p7 }
  0xa3   : > { %625 = dma.done.wait (!%p439_p9), %s312_s7, 16  }
  0xa4   : > { %627 = vsyncadd (!%p439_p9), %s312_s7, 4294967280  ;;  %s21_s14 = sadd.s32 1, %s650_s14   ;;  %s929_s9 = smov %s634_s10 }
  0xa5   : > { %p18_p11 = scmp.ge.s32.totalorder %s21_s14, 4   ;;  %s930_s10 = smov %s638_s11 }
  0xa6   : > { %s931_s11 = smov %s728_s23  ;;  %s932_s12 = smov %s646_s13 }
  0xa7   : > { %s933_s13 = smov %s935_s17  ;;  %20 = sbr.rel (!%p18_p11) target bundleno = 8 (0x8), region = 92 }
  0xae   :  { %316 = vsyncpa [#allocation3], 1 }
  0xaf   :  { %318 = vsyncpa [#allocation3 + $0x1], 1 }
  0xb0   :  { %319 = vsyncpa [#allocation6], 1 }
  0xb1   :  { %321 = vsyncpa [#allocation6 + $0x1], 1 }
  0xb2   :  { %322 = vsyncpa [#allocation4], 1 }
  0xb3   :  { %324 = vsyncpa [#allocation4 + $0x1], 1 }

</bundles_post_ra>
